<compile_context>
chip_gen: v7x
topology: tpu7x:2x2x1
jax: 0.10.0
libtpu: 0.0.40
codegen_flags: <defaults>
</compile_context>

<pallas_src>
import functools

import jax
import jax.numpy as jnp
from jax.experimental import pallas as pl
from jax.experimental.pallas import tpu as pltpu


# ----------------------------------------------------------------------------
# Generation-aware VMEM budgets (v5e/v6e: 128 MiB physical, v7x: 64 MiB).
# ----------------------------------------------------------------------------
def _query_vmem_capacity():
    try:
        return int(pltpu.get_tpu_info().vmem_capacity_bytes)
    except Exception:
        return 64 * 1024 * 1024          # conservative (v7x-sized) fallback


_VMEM_CAP = _query_vmem_capacity()
_VMEM_LIMIT = int(min(_VMEM_CAP * 3 // 4, 100 * 1024 * 1024))
_WORKSET_BUDGET = int(_VMEM_LIMIT * 0.8)     # headroom for compiler temporaries


def _round_up(v, m):
    return (v + m - 1) // m * m


def _tile(dim, target, align):
    """Largest tile <= target that divides `dim` and is a multiple of `align`;
    falls back to the full dim (always a legal block shape)."""
    if dim <= target:
        return dim
    t = (target // align) * align
    while t >= align:
        if dim % t == 0:
            return t
        t -= align
    return dim


def _pick_tm(np_rows, tk, tn, out_bytes, acc_bytes, budget):
    """Largest row tile (multiple of 16, divides np_rows) whose double-buffered
    working set fits the budget.  Bigger tm => fewer passes over the weight."""
    t = np_rows
    while t >= 16:
        if np_rows % t == 0 and t % 16 == 0:
            use = (2 * t * tk * 2            # x tile, bf16, double-buffered
                   + 2 * tk * tn * 2         # w tile, bf16, double-buffered
                   + 2 * t * tn * out_bytes  # output tile, double-buffered
                   + t * tn * acc_bytes      # f32 scratch accumulator (if any)
                   + 2 * tn * 4)             # bias tile
            if use <= budget:
                return t
        t -= 16
    return min(16, np_rows)


# ----------------------------------------------------------------------------
# Tiled matmul + bias kernels (hoisted LSTM input projection and fc layer).
# bf16 operands on the MXU, f32 accumulation.
# ----------------------------------------------------------------------------
def _matmul_bias_f32_kernel(x_ref, w_ref, b_ref, o_ref):
    """f32 output: accumulate directly into the resident output tile."""
    @pl.when(pl.program_id(2) == 0)
    def _():
        o_ref[...] = jnp.broadcast_to(b_ref[...], o_ref.shape)

    o_ref[...] += jnp.dot(x_ref[...], w_ref[...],
                          preferred_element_type=jnp.float32)


def _matmul_bias_bf16_kernel(x_ref, w_ref, b_ref, o_ref, acc_ref):
    """bf16 output: f32 scratch accumulator seeded with the bias."""
    @pl.when(pl.program_id(2) == 0)
    def _():
        acc_ref[...] = jnp.broadcast_to(b_ref[...], acc_ref.shape)

    acc_ref[...] += jnp.dot(x_ref[...], w_ref[...],
                            preferred_element_type=jnp.float32)

    @pl.when(pl.program_id(2) == pl.num_programs(2) - 1)
    def _():
        o_ref[...] = acc_ref[...].astype(o_ref.dtype)


def matmul_bias(x, w_t, b, *, out_dtype=jnp.float32):
    """x: (N, K); w_t: (Kw >= K, M) pre-transposed/pre-padded bf16; b: (M,) f32.
    Returns x @ w_t[:K] + b as (N, M) in `out_dtype`."""
    N, K = x.shape
    Kw, M = w_t.shape

    # Pad activation rows to a 16-multiple (bf16 sublane packing) and the
    # contraction dim up to the pre-padded weight's row count (zero padding
    # contributes nothing to the dot).
    Np = _round_up(max(N, 16), 16)
    if Np != N or Kw != K:
        x = jnp.pad(x, ((0, Np - N), (0, Kw - K)))
    x_b = x.astype(jnp.bfloat16)
    w_b = w_t.astype(jnp.bfloat16)          # no-op when weights were pre-cast
    b2 = b.reshape(1, M).astype(jnp.float32)

    tk = _tile(Kw, 512, 128)
    tn = _tile(M, 512, 128)                 # lane-dense output tiles
    f32_out = (out_dtype == jnp.float32)
    out_bytes = 4 if f32_out else 2
    acc_bytes = 0 if f32_out else 4
    # Grow tm as far as the VMEM budget allows: with the row grid collapsed to
    # ~1 pass, the (possibly vocab-sized) weight is streamed from HBM only once.
    tm = _pick_tm(Np, tk, tn, out_bytes, acc_bytes, _WORKSET_BUDGET)

    kernel = _matmul_bias_f32_kernel if f32_out else _matmul_bias_bf16_kernel
    scratch = [] if f32_out else [pltpu.VMEM((tm, tn), jnp.float32)]

    out = pl.pallas_call(
        kernel,
        out_shape=jax.ShapeDtypeStruct((Np, M), out_dtype),
        grid=(Np // tm, M // tn, Kw // tk),
        in_specs=[
            pl.BlockSpec((tm, tk), lambda i, j, k: (i, k)),
            pl.BlockSpec((tk, tn), lambda i, j, k: (k, j)),
            pl.BlockSpec((1, tn), lambda i, j, k: (0, j)),
        ],
        out_specs=pl.BlockSpec((tm, tn), lambda i, j, k: (i, j)),
        scratch_shapes=scratch,
        compiler_params=pltpu.CompilerParams(
            dimension_semantics=("parallel", "parallel", "arbitrary"),
            vmem_limit_bytes=_VMEM_LIMIT),
    )(x_b, w_b, b2)
    return out[:N] if Np != N else out


# ----------------------------------------------------------------------------
# LSTM recurrence kernel: input-side gate pre-activations (incl. biases) are
# precomputed (bf16); each grid step processes a chunk of timesteps with a
# two-level time loop.  h/c state lives in f32 VMEM scratch.
# Gate layout along 4H is [i, f, o | g] (reordered at weight-prep time).
# ----------------------------------------------------------------------------
def _lstm_recurrence_kernel(gx_ref, w_hh_ref, y_ref, h_scr, c_scr):
    chunk = gx_ref.shape[0]
    H = h_scr.shape[-1]

    @pl.when(pl.program_id(1) == 0)
    def _():
        h_scr[...] = jnp.zeros_like(h_scr)
        c_scr[...] = jnp.zeros_like(c_scr)

    def one_step(tt):
        h = h_scr[...]                       # (Bc, H) f32
        c = c_scr[...]                       # (Bc, H) f32
        # Only the recurrent part of the gates is on the serial path (bf16 MXU,
        # f32 accumulate); input part + biases were hoisted out of the loop.
        g = gx_ref[tt].astype(jnp.float32) + jnp.dot(
            h.astype(jnp.bfloat16), w_hh_ref[...],
            preferred_element_type=jnp.float32)      # (Bc, 4H) [i, f, o, g]
        sg = jax.nn.sigmoid(g[:, :3 * H])            # i, f, o (contiguous 3H)
        g_g = jnp.tanh(g[:, 3 * H:])                 # cell candidate (last H)
        i_g = sg[:, 0 * H:1 * H]
        f_g = sg[:, 1 * H:2 * H]
        o_g = sg[:, 2 * H:3 * H]
        c_new = f_g * c + i_g * g_g
        h_new = o_g * jnp.tanh(c_new)
        c_scr[...] = c_new
        h_scr[...] = h_new
        y_ref[tt] = h_new.astype(y_ref.dtype)

    n_unroll = 4 if chunk % 4 == 0 else (2 if chunk % 2 == 0 else 1)

    def outer(o, carry):
        base = o * n_unroll
        for u in range(n_unroll):
            one_step(base + u)
        return carry

    jax.lax.fori_loop(0, chunk // n_unroll, outer, 0)


def lstm_layer(x, layer):
    """One LSTM layer.  x: (T, B, D) f32/bf16.  Returns (T, B, H) bf16."""
    T, B, D = x.shape
    w_ih_t = layer["w_ih_t"]          # (Dp, 4H) bf16, gate order [i, f, o, g]
    w_hh_t = layer["w_hh_t"]          # (H, 4H)  bf16
    bias = layer["bias"]              # (4H,)    f32  (= b_ih + b_hh, permuted)
    H = w_hh_t.shape[0]

    # Hoisted input projection for all timesteps (biases folded in); stored
    # bf16 to halve HBM traffic of the (T, B, 4H) intermediate.
    gates_x = matmul_bias(x.reshape(T * B, D), w_ih_t, bias,
                          out_dtype=jnp.bfloat16)
    gates_x = gates_x.reshape(T, B, 4 * H)

    # v7x megacore: independent batch halves on the two TensorCores (sublane-
    # aligned halves only); degenerates to a size-1 axis otherwise.
    nb = 2 if (B % 2 == 0 and B // 2 >= 8) else 1
    Bc = B // nb

    # Time-chunk from the VMEM budget (gx/y blocks double-buffered + w_hh + state).
    fixed = 2 * H * (4 * H) * 2 + 2 * Bc * H * 4
    per_t = 2 * Bc * (4 * H) * 2 + 2 * Bc * H * 2
    chunk = int(max(1, min(32, (_WORKSET_BUDGET - fixed) // per_t, T)))
    if chunk >= 4:
        chunk -= chunk % 4            # keep the 4x inner unroll clean
    Tp = _round_up(T, chunk)          # pad T so chunk never degrades to 1
    if Tp != T:
        gates_x = jnp.pad(gates_x, ((0, Tp - T), (0, 0), (0, 0)))

    y = pl.pallas_call(
        _lstm_recurrence_kernel,
        out_shape=jax.ShapeDtypeStruct((Tp, B, H), jnp.bfloat16),
        grid=(nb, Tp // chunk),
        in_specs=[
            pl.BlockSpec((chunk, Bc, 4 * H), lambda b, t: (t, b, 0)),
            # constant block index -> fetched from HBM only once
            pl.BlockSpec((H, 4 * H), lambda b, t: (0, 0)),
        ],
        out_specs=pl.BlockSpec((chunk, Bc, H), lambda b, t: (t, b, 0)),
        scratch_shapes=[
            pltpu.VMEM((Bc, H), jnp.float32),   # h state
            pltpu.VMEM((Bc, H), jnp.float32),   # c state
        ],
        compiler_params=pltpu.CompilerParams(
            dimension_semantics=("parallel", "arbitrary"),
            vmem_limit_bytes=_VMEM_LIMIT),
    )(gates_x, w_hh_t)
    return y[:T] if Tp != T else y


# ----------------------------------------------------------------------------
# One-time weight preparation: gate reorder, transpose, 128-pad, bf16 cast.
# ----------------------------------------------------------------------------
def _permute_gates(a, H):
    # PyTorch gate order along 4H is [i, f, g, o]; reorder to [i, f, o, g] so
    # sigmoid covers a contiguous 3H prefix and tanh the trailing H.
    return jnp.concatenate([a[0:2 * H], a[3 * H:4 * H], a[2 * H:3 * H]], axis=0)


def prepare_params(params):
    prep = {"embedding": params["embedding"].astype(jnp.float32), "lstm": []}
    for layer in params["lstm"]:
        H = layer["w_hh"].shape[1]
        w_ih = _permute_gates(layer["w_ih"], H)                     # (4H, D)
        w_hh = _permute_gates(layer["w_hh"], H)                     # (4H, H)
        bias = _permute_gates(layer["b_ih"] + layer["b_hh"], H)     # (4H,)
        D = w_ih.shape[1]
        Dp = _round_up(D, 128)
        w_ih_t = jnp.pad(jnp.transpose(w_ih), ((0, Dp - D), (0, 0)))
        prep["lstm"].append({
            "w_ih_t": w_ih_t.astype(jnp.bfloat16),                  # (Dp, 4H)
            "w_hh_t": jnp.transpose(w_hh).astype(jnp.bfloat16),     # (H, 4H)
            "bias": bias.astype(jnp.float32),                       # (4H,)
        })
    V, Hd = params["fc_w"].shape
    Vp, Hp = _round_up(V, 128), _round_up(Hd, 128)
    fc_w_t = jnp.pad(jnp.transpose(params["fc_w"]), ((0, Hp - Hd), (0, Vp - V)))
    prep["fc_w_t"] = fc_w_t.astype(jnp.bfloat16)                    # (Hp, Vp)
    prep["fc_b"] = jnp.pad(params["fc_b"], (0, Vp - V)).astype(jnp.float32)
    return prep


# ----------------------------------------------------------------------------
# Full forward pass (embedding gather is glue; projection/LSTM/fc are Pallas).
# ----------------------------------------------------------------------------
@functools.partial(jax.jit, static_argnums=(2,))
def language_model_forward(tokens, prep, vocab_size):
    # Embedding lookup (glue gather).  Dropout layers are identity (eval mode).
    x = jnp.take(prep["embedding"], tokens, axis=0)        # (T, B, E) f32
    for layer in prep["lstm"]:
        x = lstm_layer(x, layer)                           # (T, B, H) bf16
    T, B, H = x.shape
    logits = matmul_bias(x.reshape(T * B, H), prep["fc_w_t"], prep["fc_b"],
                         out_dtype=jnp.float32)            # (T*B, Vp) f32
    return logits[:, :vocab_size].reshape(T, B, vocab_size)


def init_params(key, vocab_size, embedding_dim, hidden_dim, n_layers):
    keys = jax.random.split(key, 4 + 4 * n_layers)
    k = 1.0 / jnp.sqrt(hidden_dim)
    params = {
        "embedding": jax.random.normal(keys[0], (vocab_size, embedding_dim),
                                       jnp.float32),
        "fc_w": jax.random.uniform(keys[1], (vocab_size, hidden_dim),
                                   jnp.float32, -k, k),
        "fc_b": jax.random.uniform(keys[2], (vocab_size,), jnp.float32, -k, k),
        "lstm": [],
    }
    for l in range(n_layers):
        d_in = embedding_dim if l == 0 else hidden_dim
        kk = keys[4 + 4 * l: 8 + 4 * l]
        params["lstm"].append({
            "w_ih": jax.random.uniform(kk[0], (4 * hidden_dim, d_in),
                                       jnp.float32, -k, k),
            "w_hh": jax.random.uniform(kk[1], (4 * hidden_dim, hidden_dim),
                                       jnp.float32, -k, k),
            "b_ih": jax.random.uniform(kk[2], (4 * hidden_dim,),
                                       jnp.float32, -k, k),
            "b_hh": jax.random.uniform(kk[3], (4 * hidden_dim,),
                                       jnp.float32, -k, k),
        })
    return params


if __name__ == "__main__":
    vocab_size = 32
    embedding_dim = 16
    hidden_dim = 32
    n_layers = 2
    seq_len = 8
    batch = 2

    root = jax.random.PRNGKey(0)
    k_param, k_tok = jax.random.split(root)
    params = init_params(k_param, vocab_size, embedding_dim, hidden_dim, n_layers)
    prep = prepare_params(params)   # one-time weight prep (outside the jit)

    # tokens: (T, B) int32, time-major (nn.LSTM default batch_first=False)
    tokens = jax.random.randint(k_tok, (seq_len, batch), 0, vocab_size,
                                dtype=jnp.int32)

    logits = language_model_forward(tokens, prep, vocab_size)
    jax.block_until_ready(logits)
    assert logits.shape == (seq_len, batch, vocab_size)
    assert bool(jnp.all(jnp.isfinite(logits)))
    print("KERNEL_OK")
</pallas_src>

<mosaic_0001>
module attributes {stable_mosaic.version = 11 : i64} {
  func.func @_matmul_bias_bf16_kernel(%arg0: i32, %arg1: i32, %arg2: i32, %arg3: memref<16x128xbf16, #tpu.memory_space<vmem>>, %arg4: memref<128x128xbf16, #tpu.memory_space<vmem>>, %arg5: memref<1x128xf32, #tpu.memory_space<vmem>>, %arg6: memref<16x128xbf16, #tpu.memory_space<vmem>>, %arg7: memref<16x128xf32, #tpu.memory_space<vmem>>) attributes {dimension_semantics = [#tpu.dimension_semantics<parallel>, #tpu.dimension_semantics<parallel>, #tpu.dimension_semantics<arbitrary>], iteration_bounds = array<i64: 1, 1, 1>, scalar_prefetch = 0 : i64, scratch_operands = 1 : i64, tpu.core_type = #tpu.core_type<tc>, window_params = [{transform_indices = @transform_0, window_bounds = array<i64: 16, 128>}, {transform_indices = @transform_1, window_bounds = array<i64: 128, 128>}, {transform_indices = @transform_2, window_bounds = array<i64: 1, 128>}, {transform_indices = @transform_3, window_bounds = array<i64: 16, 128>}]} {
    %c0_i32 = arith.constant 0 : i32
    %0 = arith.cmpi eq, %arg2, %c0_i32 : i32
    %1 = arith.extui %0 : i1 to i32
    %c0_i32_0 = arith.constant 0 : i32
    %2 = arith.cmpi ne, %1, %c0_i32_0 : i32
    scf.if %2 {
      %c0_10 = arith.constant 0 : index
      %c0_11 = arith.constant 0 : index
      %12 = vector.load %arg5[%c0_10, %c0_11] : memref<1x128xf32, #tpu.memory_space<vmem>>, vector<1x128xf32>
      %13 = vector.shape_cast %12 : vector<1x128xf32> to vector<1x128xf32>
      %14 = vector.broadcast %13 : vector<1x128xf32> to vector<16x128xf32>
      %c0_12 = arith.constant 0 : index
      %c0_13 = arith.constant 0 : index
      %15 = vector.load %arg7[%c0_12, %c0_13] : memref<16x128xf32, #tpu.memory_space<vmem>>, vector<16x128xf32>
      tpu.vector_store %arg7[%c0_12, %c0_13], %14 {strides = array<i32>} : memref<16x128xf32, #tpu.memory_space<vmem>>, vector<16x128xf32>,
    } else {
    }
    %c0 = arith.constant 0 : index
    %c0_1 = arith.constant 0 : index
    %3 = vector.load %arg7[%c0, %c0_1] : memref<16x128xf32, #tpu.memory_space<vmem>>, vector<16x128xf32>
    %c0_2 = arith.constant 0 : index
    %c0_3 = arith.constant 0 : index
    %4 = vector.load %arg3[%c0_2, %c0_3] : memref<16x128xbf16, #tpu.memory_space<vmem>>, vector<16x128xbf16>
    %c0_4 = arith.constant 0 : index
    %c0_5 = arith.constant 0 : index
    %5 = vector.load %arg4[%c0_4, %c0_5] : memref<128x128xbf16, #tpu.memory_space<vmem>>, vector<128x128xbf16>
    %cst = arith.constant dense<0.000000e+00> : vector<16x128xf32>
    %6 = tpu.matmul %4, %5, %cst {dimension_numbers = #tpu.dot_dimension_numbers<[1], [0], [0], [1], [0, 0, 1, 1], [], []>} : vector<16x128xbf16>, vector<128x128xbf16>, vector<16x128xf32> -> vector<16x128xf32>
    %7 = arith.addf %3, %6 : vector<16x128xf32>
    %c0_6 = arith.constant 0 : index
    %c0_7 = arith.constant 0 : index
    %8 = vector.load %arg7[%c0_6, %c0_7] : memref<16x128xf32, #tpu.memory_space<vmem>>, vector<16x128xf32>
    tpu.vector_store %arg7[%c0_6, %c0_7], %7 {strides = array<i32>} : memref<16x128xf32, #tpu.memory_space<vmem>>, vector<16x128xf32>,
    %c0_i32_8 = arith.constant 0 : i32
    %9 = arith.cmpi eq, %arg2, %c0_i32_8 : i32
    %10 = arith.extui %9 : i1 to i32
    %c0_i32_9 = arith.constant 0 : i32
    %11 = arith.cmpi ne, %10, %c0_i32_9 : i32
    scf.if %11 {
      %c0_10 = arith.constant 0 : index
      %c0_11 = arith.constant 0 : index
      %12 = vector.load %arg7[%c0_10, %c0_11] : memref<16x128xf32, #tpu.memory_space<vmem>>, vector<16x128xf32>
      %13 = arith.truncf %12 : vector<16x128xf32> to vector<16x128xbf16>
      %c0_12 = arith.constant 0 : index
      %c0_13 = arith.constant 0 : index
      %14 = vector.load %arg6[%c0_12, %c0_13] : memref<16x128xbf16, #tpu.memory_space<vmem>>, vector<16x128xbf16>
      tpu.vector_store %arg6[%c0_12, %c0_13], %13 {strides = array<i32>} : memref<16x128xbf16, #tpu.memory_space<vmem>>, vector<16x128xbf16>,
    } else {
    }
    return
  }
  func.func @transform_0(%arg0: i32, %arg1: i32, %arg2: i32) -> (i32, i32) {
    %c0_i32 = arith.constant 0 : i32
    return %arg0, %arg2 : i32, i32
  }
  func.func @transform_1(%arg0: i32, %arg1: i32, %arg2: i32) -> (i32, i32) {
    %c0_i32 = arith.constant 0 : i32
    return %arg2, %arg1 : i32, i32
  }
  func.func @transform_2(%arg0: i32, %arg1: i32, %arg2: i32) -> (i32, i32) {
    %c0_i32 = arith.constant 0 : i32
    %c0_i32_0 = arith.constant 0 : i32
    return %c0_i32, %arg1 : i32, i32
  }
  func.func @transform_3(%arg0: i32, %arg1: i32, %arg2: i32) -> (i32, i32) {
    %c0_i32 = arith.constant 0 : i32
    return %arg0, %arg1 : i32, i32
  }
}

module attributes {stable_mosaic.version = 11 : i64} {
  func.func @_matmul_bias_f32_kernel(%arg0: i32, %arg1: i32, %arg2: i32, %arg3: memref<16x128xbf16, #tpu.memory_space<vmem>>, %arg4: memref<128x128xbf16, #tpu.memory_space<vmem>>, %arg5: memref<1x128xf32, #tpu.memory_space<vmem>>, %arg6: memref<16x128xf32, #tpu.memory_space<vmem>>) attributes {dimension_semantics = [#tpu.dimension_semantics<parallel>, #tpu.dimension_semantics<parallel>, #tpu.dimension_semantics<arbitrary>], iteration_bounds = array<i64: 1, 1, 1>, scalar_prefetch = 0 : i64, scratch_operands = 0 : i64, tpu.core_type = #tpu.core_type<tc>, window_params = [{transform_indices = @transform_0, window_bounds = array<i64: 16, 128>}, {transform_indices = @transform_1, window_bounds = array<i64: 128, 128>}, {transform_indices = @transform_2, window_bounds = array<i64: 1, 128>}, {transform_indices = @transform_3, window_bounds = array<i64: 16, 128>}]} {
    %c0_i32 = arith.constant 0 : i32
    %0 = arith.cmpi eq, %arg2, %c0_i32 : i32
    %1 = arith.extui %0 : i1 to i32
    %c0_i32_0 = arith.constant 0 : i32
    %2 = arith.cmpi ne, %1, %c0_i32_0 : i32
    scf.if %2 {
      %c0_8 = arith.constant 0 : index
      %c0_9 = arith.constant 0 : index
      %9 = vector.load %arg5[%c0_8, %c0_9] : memref<1x128xf32, #tpu.memory_space<vmem>>, vector<1x128xf32>
      %10 = vector.shape_cast %9 : vector<1x128xf32> to vector<1x128xf32>
      %11 = vector.broadcast %10 : vector<1x128xf32> to vector<16x128xf32>
      %c0_10 = arith.constant 0 : index
      %c0_11 = arith.constant 0 : index
      %12 = vector.load %arg6[%c0_10, %c0_11] : memref<16x128xf32, #tpu.memory_space<vmem>>, vector<16x128xf32>
      tpu.vector_store %arg6[%c0_10, %c0_11], %11 {strides = array<i32>} : memref<16x128xf32, #tpu.memory_space<vmem>>, vector<16x128xf32>,
    } else {
    }
    %c0 = arith.constant 0 : index
    %c0_1 = arith.constant 0 : index
    %3 = vector.load %arg6[%c0, %c0_1] : memref<16x128xf32, #tpu.memory_space<vmem>>, vector<16x128xf32>
    %c0_2 = arith.constant 0 : index
    %c0_3 = arith.constant 0 : index
    %4 = vector.load %arg3[%c0_2, %c0_3] : memref<16x128xbf16, #tpu.memory_space<vmem>>, vector<16x128xbf16>
    %c0_4 = arith.constant 0 : index
    %c0_5 = arith.constant 0 : index
    %5 = vector.load %arg4[%c0_4, %c0_5] : memref<128x128xbf16, #tpu.memory_space<vmem>>, vector<128x128xbf16>
    %cst = arith.constant dense<0.000000e+00> : vector<16x128xf32>
    %6 = tpu.matmul %4, %5, %cst {dimension_numbers = #tpu.dot_dimension_numbers<[1], [0], [0], [1], [0, 0, 1, 1], [], []>} : vector<16x128xbf16>, vector<128x128xbf16>, vector<16x128xf32> -> vector<16x128xf32>
    %7 = arith.addf %3, %6 : vector<16x128xf32>
    %c0_6 = arith.constant 0 : index
    %c0_7 = arith.constant 0 : index
    %8 = vector.load %arg6[%c0_6, %c0_7] : memref<16x128xf32, #tpu.memory_space<vmem>>, vector<16x128xf32>
    tpu.vector_store %arg6[%c0_6, %c0_7], %7 {strides = array<i32>} : memref<16x128xf32, #tpu.memory_space<vmem>>, vector<16x128xf32>,
    return
  }
  func.func @transform_0(%arg0: i32, %arg1: i32, %arg2: i32) -> (i32, i32) {
    %c0_i32 = arith.constant 0 : i32
    return %arg0, %arg2 : i32, i32
  }
  func.func @transform_1(%arg0: i32, %arg1: i32, %arg2: i32) -> (i32, i32) {
    %c0_i32 = arith.constant 0 : i32
    return %arg2, %arg1 : i32, i32
  }
  func.func @transform_2(%arg0: i32, %arg1: i32, %arg2: i32) -> (i32, i32) {
    %c0_i32 = arith.constant 0 : i32
    %c0_i32_0 = arith.constant 0 : i32
    return %c0_i32, %arg1 : i32, i32
  }
  func.func @transform_3(%arg0: i32, %arg1: i32, %arg2: i32) -> (i32, i32) {
    %c0_i32 = arith.constant 0 : i32
    return %arg0, %arg1 : i32, i32
  }
}

module attributes {stable_mosaic.version = 11 : i64} {
  func.func @_lstm_recurrence_kernel(%arg0: i32, %arg1: i32, %arg2: memref<8x2x128xbf16, #tpu.memory_space<vmem>>, %arg3: memref<32x128xbf16, #tpu.memory_space<vmem>>, %arg4: memref<8x2x32xbf16, #tpu.memory_space<vmem>>, %arg5: memref<2x32xf32, #tpu.memory_space<vmem>>, %arg6: memref<2x32xf32, #tpu.memory_space<vmem>>) attributes {dimension_semantics = [#tpu.dimension_semantics<parallel>, #tpu.dimension_semantics<arbitrary>], iteration_bounds = array<i64: 1, 1>, scalar_prefetch = 0 : i64, scratch_operands = 2 : i64, tpu.core_type = #tpu.core_type<tc>, window_params = [{transform_indices = @transform_0, window_bounds = array<i64: 8, 2, 128>}, {pipeline_mode = #tpu.pipeline_mode<synchronous>, transform_indices = @transform_1, window_bounds = array<i64: 32, 128>}, {transform_indices = @transform_2, window_bounds = array<i64: 8, 2, 32>}]} {
    %c0_i32 = arith.constant 0 : i32
    %0 = arith.cmpi eq, %arg1, %c0_i32 : i32
    %1 = arith.extui %0 : i1 to i32
    %c0_i32_0 = arith.constant 0 : i32
    %2 = arith.cmpi ne, %1, %c0_i32_0 : i32
    scf.if %2 {
      %cst = arith.constant 0.000000e+00 : f32
      %4 = vector.broadcast %cst : f32 to vector<2x32xf32>
      %c0 = arith.constant 0 : index
      %c0_3 = arith.constant 0 : index
      %5 = vector.load %arg5[%c0, %c0_3] : memref<2x32xf32, #tpu.memory_space<vmem>>, vector<2x32xf32>
      tpu.vector_store %arg5[%c0, %c0_3], %4 {strides = array<i32>} : memref<2x32xf32, #tpu.memory_space<vmem>>, vector<2x32xf32>,
      %cst_4 = arith.constant 0.000000e+00 : f32
      %6 = vector.broadcast %cst_4 : f32 to vector<2x32xf32>
      %c0_5 = arith.constant 0 : index
      %c0_6 = arith.constant 0 : index
      %7 = vector.load %arg6[%c0_5, %c0_6] : memref<2x32xf32, #tpu.memory_space<vmem>>, vector<2x32xf32>
      tpu.vector_store %arg6[%c0_5, %c0_6], %6 {strides = array<i32>} : memref<2x32xf32, #tpu.memory_space<vmem>>, vector<2x32xf32>,
    } else {
    }
    %c0_i32_1 = arith.constant 0 : i32
    %c2_i32 = arith.constant 2 : i32
    %3 = arith.addi %c0_i32_1, %c2_i32 : i32
    %c1_i32 = arith.constant 1 : i32
    scf.for %arg7 = %c0_i32_1 to %3 step %c1_i32  : i32 {
      %c4_i32 = arith.constant 4 : i32
      %4 = arith.muli %arg7, %c4_i32 : i32
      %c0_i32_3 = arith.constant 0 : i32
      %5 = arith.addi %4, %c0_i32_3 : i32
      %c0 = arith.constant 0 : index
      %c0_4 = arith.constant 0 : index
      %6 = vector.load %arg5[%c0, %c0_4] : memref<2x32xf32, #tpu.memory_space<vmem>>, vector<2x32xf32>
      %c0_5 = arith.constant 0 : index
      %c0_6 = arith.constant 0 : index
      %7 = vector.load %arg6[%c0_5, %c0_6] : memref<2x32xf32, #tpu.memory_space<vmem>>, vector<2x32xf32>
      %8 = arith.index_cast %5 : i32 to index
      %c0_7 = arith.constant 0 : index
      %c0_8 = arith.constant 0 : index
      %9 = vector.load %arg2[%8, %c0_7, %c0_8] : memref<8x2x128xbf16, #tpu.memory_space<vmem>>, vector<1x2x128xbf16>
      %10 = vector.shape_cast %9 : vector<1x2x128xbf16> to vector<2x128xbf16>
      %11 = arith.extf %10 : vector<2x128xbf16> to vector<2x128xf32>
      %12 = arith.truncf %6 : vector<2x32xf32> to vector<2x32xbf16>
      %c0_9 = arith.constant 0 : index
      %c0_10 = arith.constant 0 : index
      %13 = vector.load %arg3[%c0_9, %c0_10] : memref<32x128xbf16, #tpu.memory_space<vmem>>, vector<32x128xbf16>
      %cst = arith.constant dense<0.000000e+00> : vector<2x128xf32>
      %14 = tpu.matmul %12, %13, %cst {dimension_numbers = #tpu.dot_dimension_numbers<[1], [0], [0], [1], [0, 0, 1, 1], [], []>} : vector<2x32xbf16>, vector<32x128xbf16>, vector<2x128xf32> -> vector<2x128xf32>
      %15 = arith.addf %11, %14 : vector<2x128xf32>
      %16 = vector.extract_strided_slice %15 {offsets = [0, 0], sizes = [2, 96], strides = [1, 1]} : vector<2x128xf32> to vector<2x96xf32>
      %17 = arith.negf %16 : vector<2x96xf32>
      %18 = math.exp %17 : vector<2x96xf32>
      %cst_11 = arith.constant 1.000000e+00 : f32
      %19 = vector.broadcast %cst_11 : f32 to vector<2x96xf32>
      %20 = arith.addf %19, %18 : vector<2x96xf32>
      %21 = arith.divf %19, %20 : vector<2x96xf32>
      %22 = vector.extract_strided_slice %15 {offsets = [0, 96], sizes = [2, 32], strides = [1, 1]} : vector<2x128xf32> to vector<2x32xf32>
      %23 = math.tanh %22 : vector<2x32xf32>
      %24 = vector.extract_strided_slice %21 {offsets = [0, 0], sizes = [2, 32], strides = [1, 1]} : vector<2x96xf32> to vector<2x32xf32>
      %25 = vector.extract_strided_slice %21 {offsets = [0, 32], sizes = [2, 32], strides = [1, 1]} : vector<2x96xf32> to vector<2x32xf32>
      %26 = vector.extract_strided_slice %21 {offsets = [0, 64], sizes = [2, 32], strides = [1, 1]} : vector<2x96xf32> to vector<2x32xf32>
      %27 = arith.mulf %25, %7 : vector<2x32xf32>
      %28 = arith.mulf %24, %23 : vector<2x32xf32>
      %29 = arith.addf %27, %28 : vector<2x32xf32>
      %30 = math.tanh %29 : vector<2x32xf32>
      %31 = arith.mulf %26, %30 : vector<2x32xf32>
      %c0_12 = arith.constant 0 : index
      %c0_13 = arith.constant 0 : index
      %32 = vector.load %arg6[%c0_12, %c0_13] : memref<2x32xf32, #tpu.memory_space<vmem>>, vector<2x32xf32>
      tpu.vector_store %arg6[%c0_12, %c0_13], %29 {strides = array<i32>} : memref<2x32xf32, #tpu.memory_space<vmem>>, vector<2x32xf32>,
      %c0_14 = arith.constant 0 : index
      %c0_15 = arith.constant 0 : index
      %33 = vector.load %arg5[%c0_14, %c0_15] : memref<2x32xf32, #tpu.memory_space<vmem>>, vector<2x32xf32>
      tpu.vector_store %arg5[%c0_14, %c0_15], %31 {strides = array<i32>} : memref<2x32xf32, #tpu.memory_space<vmem>>, vector<2x32xf32>,
      %34 = arith.truncf %31 : vector<2x32xf32> to vector<2x32xbf16>
      %35 = arith.index_cast %5 : i32 to index
      %c0_16 = arith.constant 0 : index
      %c0_17 = arith.constant 0 : index
      %36 = vector.load %arg4[%35, %c0_16, %c0_17] : memref<8x2x32xbf16, #tpu.memory_space<vmem>>, vector<1x2x32xbf16>
      %37 = vector.shape_cast %36 : vector<1x2x32xbf16> to vector<2x32xbf16>
      %38 = vector.shape_cast %34 : vector<2x32xbf16> to vector<1x2x32xbf16>
      tpu.vector_store %arg4[%35, %c0_16, %c0_17], %38 {strides = array<i32>} : memref<8x2x32xbf16, #tpu.memory_space<vmem>>, vector<1x2x32xbf16>,
      %c1_i32_18 = arith.constant 1 : i32
      %39 = arith.addi %4, %c1_i32_18 : i32
      %c0_19 = arith.constant 0 : index
      %c0_20 = arith.constant 0 : index
      %40 = vector.load %arg5[%c0_19, %c0_20] : memref<2x32xf32, #tpu.memory_space<vmem>>, vector<2x32xf32>
      %c0_21 = arith.constant 0 : index
      %c0_22 = arith.constant 0 : index
      %41 = vector.load %arg6[%c0_21, %c0_22] : memref<2x32xf32, #tpu.memory_space<vmem>>, vector<2x32xf32>
      %42 = arith.index_cast %39 : i32 to index
      %c0_23 = arith.constant 0 : index
      %c0_24 = arith.constant 0 : index
      %43 = vector.load %arg2[%42, %c0_23, %c0_24] : memref<8x2x128xbf16, #tpu.memory_space<vmem>>, vector<1x2x128xbf16>
      %44 = vector.shape_cast %43 : vector<1x2x128xbf16> to vector<2x128xbf16>
      %45 = arith.extf %44 : vector<2x128xbf16> to vector<2x128xf32>
      %46 = arith.truncf %40 : vector<2x32xf32> to vector<2x32xbf16>
      %c0_25 = arith.constant 0 : index
      %c0_26 = arith.constant 0 : index
      %47 = vector.load %arg3[%c0_25, %c0_26] : memref<32x128xbf16, #tpu.memory_space<vmem>>, vector<32x128xbf16>
      %cst_27 = arith.constant dense<0.000000e+00> : vector<2x128xf32>
      %48 = tpu.matmul %46, %47, %cst_27 {dimension_numbers = #tpu.dot_dimension_numbers<[1], [0], [0], [1], [0, 0, 1, 1], [], []>} : vector<2x32xbf16>, vector<32x128xbf16>, vector<2x128xf32> -> vector<2x128xf32>
      %49 = arith.addf %45, %48 : vector<2x128xf32>
      %50 = vector.extract_strided_slice %49 {offsets = [0, 0], sizes = [2, 96], strides = [1, 1]} : vector<2x128xf32> to vector<2x96xf32>
      %51 = arith.negf %50 : vector<2x96xf32>
      %52 = math.exp %51 : vector<2x96xf32>
      %cst_28 = arith.constant 1.000000e+00 : f32
      %53 = vector.broadcast %cst_28 : f32 to vector<2x96xf32>
      %54 = arith.addf %53, %52 : vector<2x96xf32>
      %55 = arith.divf %53, %54 : vector<2x96xf32>
      %56 = vector.extract_strided_slice %49 {offsets = [0, 96], sizes = [2, 32], strides = [1, 1]} : vector<2x128xf32> to vector<2x32xf32>
      %57 = math.tanh %56 : vector<2x32xf32>
      %58 = vector.extract_strided_slice %55 {offsets = [0, 0], sizes = [2, 32], strides = [1, 1]} : vector<2x96xf32> to vector<2x32xf32>
      %59 = vector.extract_strided_slice %55 {offsets = [0, 32], sizes = [2, 32], strides = [1, 1]} : vector<2x96xf32> to vector<2x32xf32>
      %60 = vector.extract_strided_slice %55 {offsets = [0, 64], sizes = [2, 32], strides = [1, 1]} : vector<2x96xf32> to vector<2x32xf32>
      %61 = arith.mulf %59, %41 : vector<2x32xf32>
      %62 = arith.mulf %58, %57 : vector<2x32xf32>
      %63 = arith.addf %61, %62 : vector<2x32xf32>
      %64 = math.tanh %63 : vector<2x32xf32>
      %65 = arith.mulf %60, %64 : vector<2x32xf32>
      %c0_29 = arith.constant 0 : index
      %c0_30 = arith.constant 0 : index
      %66 = vector.load %arg6[%c0_29, %c0_30] : memref<2x32xf32, #tpu.memory_space<vmem>>, vector<2x32xf32>
      tpu.vector_store %arg6[%c0_29, %c0_30], %63 {strides = array<i32>} : memref<2x32xf32, #tpu.memory_space<vmem>>, vector<2x32xf32>,
      %c0_31 = arith.constant 0 : index
      %c0_32 = arith.constant 0 : index
      %67 = vector.load %arg5[%c0_31, %c0_32] : memref<2x32xf32, #tpu.memory_space<vmem>>, vector<2x32xf32>
      tpu.vector_store %arg5[%c0_31, %c0_32], %65 {strides = array<i32>} : memref<2x32xf32, #tpu.memory_space<vmem>>, vector<2x32xf32>,
      %68 = arith.truncf %65 : vector<2x32xf32> to vector<2x32xbf16>
      %69 = arith.index_cast %39 : i32 to index
      %c0_33 = arith.constant 0 : index
      %c0_34 = arith.constant 0 : index
      %70 = vector.load %arg4[%69, %c0_33, %c0_34] : memref<8x2x32xbf16, #tpu.memory_space<vmem>>, vector<1x2x32xbf16>
      %71 = vector.shape_cast %70 : vector<1x2x32xbf16> to vector<2x32xbf16>
      %72 = vector.shape_cast %68 : vector<2x32xbf16> to vector<1x2x32xbf16>
      tpu.vector_store %arg4[%69, %c0_33, %c0_34], %72 {strides = array<i32>} : memref<8x2x32xbf16, #tpu.memory_space<vmem>>, vector<1x2x32xbf16>,
      %c2_i32_35 = arith.constant 2 : i32
      %73 = arith.addi %4, %c2_i32_35 : i32
      %c0_36 = arith.constant 0 : index
      %c0_37 = arith.constant 0 : index
      %74 = vector.load %arg5[%c0_36, %c0_37] : memref<2x32xf32, #tpu.memory_space<vmem>>, vector<2x32xf32>
      %c0_38 = arith.constant 0 : index
      %c0_39 = arith.constant 0 : index
      %75 = vector.load %arg6[%c0_38, %c0_39] : memref<2x32xf32, #tpu.memory_space<vmem>>, vector<2x32xf32>
      %76 = arith.index_cast %73 : i32 to index
      %c0_40 = arith.constant 0 : index
      %c0_41 = arith.constant 0 : index
      %77 = vector.load %arg2[%76, %c0_40, %c0_41] : memref<8x2x128xbf16, #tpu.memory_space<vmem>>, vector<1x2x128xbf16>
      %78 = vector.shape_cast %77 : vector<1x2x128xbf16> to vector<2x128xbf16>
      %79 = arith.extf %78 : vector<2x128xbf16> to vector<2x128xf32>
      %80 = arith.truncf %74 : vector<2x32xf32> to vector<2x32xbf16>
      %c0_42 = arith.constant 0 : index
      %c0_43 = arith.constant 0 : index
      %81 = vector.load %arg3[%c0_42, %c0_43] : memref<32x128xbf16, #tpu.memory_space<vmem>>, vector<32x128xbf16>
      %cst_44 = arith.constant dense<0.000000e+00> : vector<2x128xf32>
      %82 = tpu.matmul %80, %81, %cst_44 {dimension_numbers = #tpu.dot_dimension_numbers<[1], [0], [0], [1], [0, 0, 1, 1], [], []>} : vector<2x32xbf16>, vector<32x128xbf16>, vector<2x128xf32> -> vector<2x128xf32>
      %83 = arith.addf %79, %82 : vector<2x128xf32>
      %84 = vector.extract_strided_slice %83 {offsets = [0, 0], sizes = [2, 96], strides = [1, 1]} : vector<2x128xf32> to vector<2x96xf32>
      %85 = arith.negf %84 : vector<2x96xf32>
      %86 = math.exp %85 : vector<2x96xf32>
      %cst_45 = arith.constant 1.000000e+00 : f32
      %87 = vector.broadcast %cst_45 : f32 to vector<2x96xf32>
      %88 = arith.addf %87, %86 : vector<2x96xf32>
      %89 = arith.divf %87, %88 : vector<2x96xf32>
      %90 = vector.extract_strided_slice %83 {offsets = [0, 96], sizes = [2, 32], strides = [1, 1]} : vector<2x128xf32> to vector<2x32xf32>
      %91 = math.tanh %90 : vector<2x32xf32>
      %92 = vector.extract_strided_slice %89 {offsets = [0, 0], sizes = [2, 32], strides = [1, 1]} : vector<2x96xf32> to vector<2x32xf32>
      %93 = vector.extract_strided_slice %89 {offsets = [0, 32], sizes = [2, 32], strides = [1, 1]} : vector<2x96xf32> to vector<2x32xf32>
      %94 = vector.extract_strided_slice %89 {offsets = [0, 64], sizes = [2, 32], strides = [1, 1]} : vector<2x96xf32> to vector<2x32xf32>
      %95 = arith.mulf %93, %75 : vector<2x32xf32>
      %96 = arith.mulf %92, %91 : vector<2x32xf32>
      %97 = arith.addf %95, %96 : vector<2x32xf32>
      %98 = math.tanh %97 : vector<2x32xf32>
      %99 = arith.mulf %94, %98 : vector<2x32xf32>
      %c0_46 = arith.constant 0 : index
      %c0_47 = arith.constant 0 : index
      %100 = vector.load %arg6[%c0_46, %c0_47] : memref<2x32xf32, #tpu.memory_space<vmem>>, vector<2x32xf32>
      tpu.vector_store %arg6[%c0_46, %c0_47], %97 {strides = array<i32>} : memref<2x32xf32, #tpu.memory_space<vmem>>, vector<2x32xf32>,
      %c0_48 = arith.constant 0 : index
      %c0_49 = arith.constant 0 : index
      %101 = vector.load %arg5[%c0_48, %c0_49] : memref<2x32xf32, #tpu.memory_space<vmem>>, vector<2x32xf32>
      tpu.vector_store %arg5[%c0_48, %c0_49], %99 {strides = array<i32>} : memref<2x32xf32, #tpu.memory_space<vmem>>, vector<2x32xf32>,
      %102 = arith.truncf %99 : vector<2x32xf32> to vector<2x32xbf16>
      %103 = arith.index_cast %73 : i32 to index
      %c0_50 = arith.constant 0 : index
      %c0_51 = arith.constant 0 : index
      %104 = vector.load %arg4[%103, %c0_50, %c0_51] : memref<8x2x32xbf16, #tpu.memory_space<vmem>>, vector<1x2x32xbf16>
      %105 = vector.shape_cast %104 : vector<1x2x32xbf16> to vector<2x32xbf16>
      %106 = vector.shape_cast %102 : vector<2x32xbf16> to vector<1x2x32xbf16>
      tpu.vector_store %arg4[%103, %c0_50, %c0_51], %106 {strides = array<i32>} : memref<8x2x32xbf16, #tpu.memory_space<vmem>>, vector<1x2x32xbf16>,
      %c3_i32 = arith.constant 3 : i32
      %107 = arith.addi %4, %c3_i32 : i32
      %c0_52 = arith.constant 0 : index
      %c0_53 = arith.constant 0 : index
      %108 = vector.load %arg5[%c0_52, %c0_53] : memref<2x32xf32, #tpu.memory_space<vmem>>, vector<2x32xf32>
      %c0_54 = arith.constant 0 : index
      %c0_55 = arith.constant 0 : index
      %109 = vector.load %arg6[%c0_54, %c0_55] : memref<2x32xf32, #tpu.memory_space<vmem>>, vector<2x32xf32>
      %110 = arith.index_cast %107 : i32 to index
      %c0_56 = arith.constant 0 : index
      %c0_57 = arith.constant 0 : index
      %111 = vector.load %arg2[%110, %c0_56, %c0_57] : memref<8x2x128xbf16, #tpu.memory_space<vmem>>, vector<1x2x128xbf16>
      %112 = vector.shape_cast %111 : vector<1x2x128xbf16> to vector<2x128xbf16>
      %113 = arith.extf %112 : vector<2x128xbf16> to vector<2x128xf32>
      %114 = arith.truncf %108 : vector<2x32xf32> to vector<2x32xbf16>
      %c0_58 = arith.constant 0 : index
      %c0_59 = arith.constant 0 : index
      %115 = vector.load %arg3[%c0_58, %c0_59] : memref<32x128xbf16, #tpu.memory_space<vmem>>, vector<32x128xbf16>
      %cst_60 = arith.constant dense<0.000000e+00> : vector<2x128xf32>
      %116 = tpu.matmul %114, %115, %cst_60 {dimension_numbers = #tpu.dot_dimension_numbers<[1], [0], [0], [1], [0, 0, 1, 1], [], []>} : vector<2x32xbf16>, vector<32x128xbf16>, vector<2x128xf32> -> vector<2x128xf32>
      %117 = arith.addf %113, %116 : vector<2x128xf32>
      %118 = vector.extract_strided_slice %117 {offsets = [0, 0], sizes = [2, 96], strides = [1, 1]} : vector<2x128xf32> to vector<2x96xf32>
      %119 = arith.negf %118 : vector<2x96xf32>
      %120 = math.exp %119 : vector<2x96xf32>
      %cst_61 = arith.constant 1.000000e+00 : f32
      %121 = vector.broadcast %cst_61 : f32 to vector<2x96xf32>
      %122 = arith.addf %121, %120 : vector<2x96xf32>
      %123 = arith.divf %121, %122 : vector<2x96xf32>
      %124 = vector.extract_strided_slice %117 {offsets = [0, 96], sizes = [2, 32], strides = [1, 1]} : vector<2x128xf32> to vector<2x32xf32>
      %125 = math.tanh %124 : vector<2x32xf32>
      %126 = vector.extract_strided_slice %123 {offsets = [0, 0], sizes = [2, 32], strides = [1, 1]} : vector<2x96xf32> to vector<2x32xf32>
      %127 = vector.extract_strided_slice %123 {offsets = [0, 32], sizes = [2, 32], strides = [1, 1]} : vector<2x96xf32> to vector<2x32xf32>
      %128 = vector.extract_strided_slice %123 {offsets = [0, 64], sizes = [2, 32], strides = [1, 1]} : vector<2x96xf32> to vector<2x32xf32>
      %129 = arith.mulf %127, %109 : vector<2x32xf32>
      %130 = arith.mulf %126, %125 : vector<2x32xf32>
      %131 = arith.addf %129, %130 : vector<2x32xf32>
      %132 = math.tanh %131 : vector<2x32xf32>
      %133 = arith.mulf %128, %132 : vector<2x32xf32>
      %c0_62 = arith.constant 0 : index
      %c0_63 = arith.constant 0 : index
      %134 = vector.load %arg6[%c0_62, %c0_63] : memref<2x32xf32, #tpu.memory_space<vmem>>, vector<2x32xf32>
      tpu.vector_store %arg6[%c0_62, %c0_63], %131 {strides = array<i32>} : memref<2x32xf32, #tpu.memory_space<vmem>>, vector<2x32xf32>,
      %c0_64 = arith.constant 0 : index
      %c0_65 = arith.constant 0 : index
      %135 = vector.load %arg5[%c0_64, %c0_65] : memref<2x32xf32, #tpu.memory_space<vmem>>, vector<2x32xf32>
      tpu.vector_store %arg5[%c0_64, %c0_65], %133 {strides = array<i32>} : memref<2x32xf32, #tpu.memory_space<vmem>>, vector<2x32xf32>,
      %136 = arith.truncf %133 : vector<2x32xf32> to vector<2x32xbf16>
      %137 = arith.index_cast %107 : i32 to index
      %c0_66 = arith.constant 0 : index
      %c0_67 = arith.constant 0 : index
      %138 = vector.load %arg4[%137, %c0_66, %c0_67] : memref<8x2x32xbf16, #tpu.memory_space<vmem>>, vector<1x2x32xbf16>
      %139 = vector.shape_cast %138 : vector<1x2x32xbf16> to vector<2x32xbf16>
      %140 = vector.shape_cast %136 : vector<2x32xbf16> to vector<1x2x32xbf16>
      tpu.vector_store %arg4[%137, %c0_66, %c0_67], %140 {strides = array<i32>} : memref<8x2x32xbf16, #tpu.memory_space<vmem>>, vector<1x2x32xbf16>,
    }
    %c2_i32_2 = arith.constant 2 : i32
    return
  }
  func.func @transform_0(%arg0: i32, %arg1: i32) -> (i32, i32, i32) {
    %c0_i32 = arith.constant 0 : i32
    %c0_i32_0 = arith.constant 0 : i32
    return %arg1, %arg0, %c0_i32 : i32, i32, i32
  }
  func.func @transform_1(%arg0: i32, %arg1: i32) -> (i32, i32) {
    %c0_i32 = arith.constant 0 : i32
    %c0_i32_0 = arith.constant 0 : i32
    %c0_i32_1 = arith.constant 0 : i32
    return %c0_i32, %c0_i32_0 : i32, i32
  }
  func.func @transform_2(%arg0: i32, %arg1: i32) -> (i32, i32, i32) {
    %c0_i32 = arith.constant 0 : i32
    %c0_i32_0 = arith.constant 0 : i32
    return %arg1, %arg0, %c0_i32 : i32, i32, i32
  }
}

</mosaic_0001>

<bundles_post_ra>
// kernel: language_model_forward.9
= control target key start
LH: loop header
LB: loop body
LE: loop exit
PB: predicated region body
PF: predicated region fallthrough
CT: control target
= control target key end

     0   :  { %v241_v1 = vmov 0.0   ;;  %vm242_vm0 = vmmov 0   ;;  %s308_s0 = inlined_call_operand.vmem [shape: bf16[16,128], index: 0, kind: input, shape index: {}]   ;;  %s309_s1 = inlined_call_operand.vmem [shape: bf16[128,128], index: 1, kind: input, shape index: {}]   ;;  %s310_s2 = inlined_call_operand.vmem [shape: f32[1,128], index: 2, kind: input, shape index: {}]   ;;  %s311_s3 = inlined_call_operand.hbm [shape: f32[16,128], index: 3, kind: output, shape index: {}]  }
   0x1   :  { %v208_v0 = vld [vmem:[%s309_s1] sm:$0xff]   ;;  %183 = vmatprep.subr.bf16.mxu0 %v241_v1  ;;  %v209_v2 = vld [vmem:[%s309_s1 + $0x8] sm:$0xff]   ;;  %199 = vmatprep.mubr.msk.bf16.mxu0 %vm242_vm0, %v241_v1  ;;  %v210_v3 = vld [vmem:[%s309_s1 + $0x10] sm:$0xff]  }
   0x2   :  { %184 = vmatpush3.bf16.msra.mxu0 %v208_v0 }
   0x3   :  { %185 = vmatprep.subr.bf16.mxu0 %v241_v1 }
   0x6   :  { %186 = vmatpush3.bf16.msra.mxu0 %v209_v2 }
   0x7   :  { %187 = vmatprep.subr.bf16.mxu0 %v241_v1 }
   0x8   :  { %8 = vsyncpa [#allocation3], 0  ;;  %v211_v4 = vld [vmem:[%s309_s1 + $0x18] sm:$0xff]   ;;  %v212_v5 = vld [vmem:[%s309_s1 + $0x20] sm:$0xff]   ;;  %s243_s5 = smov [#allocation2]  }
   0x9   :  { %v213_v6 = vld [vmem:[%s309_s1 + $0x28] sm:$0xff]   ;;  %v214_v7 = vld [vmem:[%s309_s1 + $0x30] sm:$0xff]   ;;  %v215_v8 = vld [vmem:[%s309_s1 + $0x38] sm:$0xff]   ;;  %s153_s6 = sshll.u32 %s243_s5, 4  ;;  %s154_s6 = int_to_ptr.vmem [resolvable:$true] %s153_s6 }
   0xa   :  { %188 = vmatpush3.bf16.msra.mxu0 %v210_v3  ;;  %v216_v9 = vld [vmem:[%s308_s0] sm:$0xff]   ;;  %s217_s1 = scalar_lea.vmem %s154_s6, 256  ;;  %p222_p1 = scmp.lt.s32.totalorder %s154_s6, %s154_s6 }
   0xb   :  { %189 = vmatprep.subr.bf16.mxu0 %v241_v1  ;;  %v164_v10 = vld [vmem:[%s310_s2] ss:$0 sm:$0xff]  ;;  %p218_p0 = scmp.ne.s32.totalorder %s154_s6, %s217_s1  ;;  %p223_p2 = scmp.lt.s32.totalorder %s217_s1, %s217_s1 }
   0xd   :  { %p224_p3 = por %p223_p2, %p222_p1 }
   0xe   :  { %190 = vmatpush3.bf16.msra.mxu0 %v211_v4 }
   0xf   :  { %191 = vmatprep.subr.bf16.mxu0 %v241_v1  ;;  %p225_p4 = pnand %p224_p3, %p218_p0 }
  0x12   :  { %192 = vmatpush3.bf16.msra.mxu0 %v212_v5 }
  0x13   :  { %193 = vmatprep.subr.bf16.mxu0 %v241_v1 }
  0x16   :  { %194 = vmatpush3.bf16.msra.mxu0 %v213_v6 }
  0x17   :  { %195 = vmatprep.subr.bf16.mxu0 %v241_v1 }
  0x1a   :  { %196 = vmatpush3.bf16.msra.mxu0 %v214_v7 }
  0x1b   :  { %197 = vmatprep.subr.bf16.mxu0 %v241_v1 }
  0x1e   :  { %198 = vmatpush3.bf16.msra.mxu0 %v215_v8 }
  0x21   :  { %200 = vmatmul.mubr.bf16.vlgmr.msra.gmra.mrb[0].mxu0 %v216_v9 }
  0xf4   :  { %v137_v11 = vpop.f32.mrb[0].mxu0 }
  0xf5   :  { %v144_v12 = vadd.f32 %v164_v10, %v137_v11  ;;  %v201_v13 = vpop.f32.mrb[1].mxu0 }
  0xf6   :  { %v140_v14 = vpop.f32.mrb[2].mxu0 }
  0xf7   :  { %146 = vst [vmem:[#allocation2] sm:$0xff] %v144_v12  ;;  %v145_v15 = vadd.f32 %v164_v10, %v140_v14  ;;  %v202_v16 = vpop.f32.mrb[3].mxu0 }
  0xf9   :  { %147 = vst [vmem:[#allocation2 + $0x8] sm:$0xff] %v145_v15 }
  0xfa   :  { %228 = shalt.err (!%p225_p4)
}
  0xfb   :  { %s229_s7 = scalar_lea.hbm %s311_s3, 256 }
  0xfc   :  { %p230_p5 = scmp.ne.s32.totalorder %s311_s3, %s229_s7  ;;  %p233_p6 = scmp.lt.u32.totalorder %s229_s7, %s311_s3 }
  0xfe   :  { %p235_p7 = pnand %p233_p6, %p230_p5 }
 0x100   :  { %238 = shalt.err (!%p235_p7)
}
 0x101   :  { %s244_s12 = smov 128   ;;  %s245_s13 = smov 8  }
 0x102   :  { %159 = dma.vmem_to_hbm [thread:$0]  %s154_s6, 256, %s311_s3, [#allocation3], %s244_s12, %s244_s12, %s245_s13  }
 0x103   :  { %239 = dma.done.wait [#allocation3], 256  }
 0x104   :  { %240 = vsyncadd [#allocation3], 4294967040 }
 0x105   :  { %163 = vsyncpa [#allocation3], 1 }

// kernel: language_model_forward.5
= control target key start
LH: loop header
LB: loop body
LE: loop exit
PB: predicated region body
PF: predicated region fallthrough
CT: control target
= control target key end

     0   :  { %v225_v0 = vmov 0.0   ;;  %vm226_vm0 = vmmov 0   ;;  %s280_s1 = inlined_call_operand.vmem [shape: bf16[128,128], index: 1, kind: input, shape index: {}]   ;;  %s281_s0 = inlined_call_operand.vmem [shape: bf16[16,128], index: 0, kind: input, shape index: {}]   ;;  %s282_s2 = inlined_call_operand.vmem [shape: f32[1,128], index: 2, kind: input, shape index: {}]   ;;  %s283_s3 = inlined_call_operand.vmem [shape: bf16[16,128], index: 3, kind: output, shape index: {}]  }
   0x1   :  { %194 = vmatprep.subr.bf16.mxu0 %v225_v0  ;;  %v216_v1 = vld [vmem:[%s280_s1] sm:$0xff]   ;;  %210 = vmatprep.mubr.msk.bf16.mxu0 %vm226_vm0, %v225_v0  ;;  %v217_v2 = vld [vmem:[%s280_s1 + $0x8] sm:$0xff]   ;;  %v218_v3 = vld [vmem:[%s280_s1 + $0x10] sm:$0xff]  }
   0x2   :  { %195 = vmatpush3.bf16.msra.mxu0 %v216_v1  ;;  %v219_v4 = vld [vmem:[%s280_s1 + $0x18] sm:$0xff]   ;;  %v220_v5 = vld [vmem:[%s280_s1 + $0x20] sm:$0xff]   ;;  %v221_v6 = vld [vmem:[%s280_s1 + $0x28] sm:$0xff]  }
   0x3   :  { %196 = vmatprep.subr.bf16.mxu0 %v225_v0  ;;  %v222_v7 = vld [vmem:[%s280_s1 + $0x30] sm:$0xff]   ;;  %v223_v8 = vld [vmem:[%s280_s1 + $0x38] sm:$0xff]   ;;  %v224_v9 = vld [vmem:[%s281_s0] sm:$0xff]  }
   0x4   :  { %v166_v10 = vld [vmem:[%s282_s2] ss:$0 sm:$0xff] }
   0x6   :  { %197 = vmatpush3.bf16.msra.mxu0 %v217_v2 }
   0x7   :  { %198 = vmatprep.subr.bf16.mxu0 %v225_v0 }
   0xa   :  { %199 = vmatpush3.bf16.msra.mxu0 %v218_v3 }
   0xb   :  { %200 = vmatprep.subr.bf16.mxu0 %v225_v0 }
   0xe   :  { %201 = vmatpush3.bf16.msra.mxu0 %v219_v4 }
   0xf   :  { %202 = vmatprep.subr.bf16.mxu0 %v225_v0 }
  0x12   :  { %203 = vmatpush3.bf16.msra.mxu0 %v220_v5 }
  0x13   :  { %204 = vmatprep.subr.bf16.mxu0 %v225_v0 }
  0x16   :  { %205 = vmatpush3.bf16.msra.mxu0 %v221_v6 }
  0x17   :  { %206 = vmatprep.subr.bf16.mxu0 %v225_v0 }
  0x1a   :  { %207 = vmatpush3.bf16.msra.mxu0 %v222_v7 }
  0x1b   :  { %208 = vmatprep.subr.bf16.mxu0 %v225_v0 }
  0x1e   :  { %209 = vmatpush3.bf16.msra.mxu0 %v223_v8 }
  0x21   :  { %211 = vmatmul.mubr.bf16.vlgmr.msra.gmra.mrb[0].mxu0 %v224_v9 }
  0xf4   :  { %v136_v11 = vpop.f32.mrb[0].mxu0 }
  0xf5   :  { %v212_v12 = vpop.f32.mrb[1].mxu0  ;;  %v143_v14 = vadd.f32 %v166_v10, %v136_v11 }
  0xf6   :  { %v139_v13 = vpop.f32.mrb[2].mxu0 }
  0xf7   :  { %v144_v15 = vadd.f32 %v166_v10, %v139_v13  ;;  %v213_v16 = vpop.f32.mrb[3].mxu0 }
  0xf9   :  { %v183_v17 = vpack.c.bf16 %v144_v15, %v143_v14 }
  0xfb   :  { %184 = vst [vmem:[%s283_s3] sm:$0xff] %v183_v17  }

// kernel: language_model_forward.6
= control target key start
LH: loop header
LB: loop body
LE: loop exit
PB: predicated region body
PF: predicated region fallthrough
CT: control target
= control target key end

     0   :  { %vm16_vm0 = vcmask 254976   ;;  %v788_v0 = vmov 0.0   ;;  %s813_s9 = smov 0   ;;  %s946_s0 = inlined_call_operand.vmem [shape: bf16[8,2,128], index: 0, kind: input, shape index: {}]   ;;  %s947_s1 = inlined_call_operand.vmem [shape: bf16[32,128], index: 1, kind: input, shape index: {}]   ;;  %s948_s2 = inlined_call_operand.vmem [shape: bf16[8,2,32], index: 2, kind: output, shape index: {}]  }
   0x1   :  { %17 = vst.msk [vmem:[#allocation2] sm:$0x3] %vm16_vm0, %v788_v0  ;;  %18 = vst.msk [vmem:[#allocation3] sm:$0x3] %vm16_vm0, %v788_v0 }
   0x2 LB: > { %v740_v1 = vld [vmem:[%s947_s1] sm:$0xff]   ;;  %v789_v2 = vmov 0.0   ;;  %v741_v3 = vld [vmem:[%s947_s1 + $0x8] sm:$0xff]   ;;  %vm790_vm1 = vmmov 0   ;;  %vm48_vm2 = vcmask 261120   ;;  %s647_s14 = sshll.u32 %s786_s9, 2  ;;  %v132_v27 = vlaneseq  ;;  %s786_s9 = sphi %s813_s9, %s24_s9  }
   0x3   : > { %692 = vmatprep.subr.bf16.mxu0 %v789_v2  ;;  %700 = vmatprep.subr.bf16.mxu1 %v789_v2  ;;  %s841_s17 = scalar_lea.vmem %s946_s0, %s647_s14  ;;  %s791_s18 = smov 32   ;;  %v792_v25 = vmov 1983009808   ;;  %v742_v33 = vld [vmem:[%s947_s1] sm:$0xff]   ;;  %v743_v34 = vld [vmem:[%s947_s1 + $0x8] sm:$0xff]   ;;  %vm173_vm3 = vcmask 253952  }
   0x4   : > { %693 = vmatpush3.bf16.msra.mxu0 %v740_v1  ;;  %696 = vmatprep.mubr.msk.bf16.mxu0 %vm790_vm1, %v789_v2  ;;  %v29_v6 = vld [vmem:[%s841_s17] sm:$0x1]  ;;  %v130_v26 = vunpack.c.l.s4 %v792_v25  ;;  %v847_v29 = vshrl.u32 %v132_v27, 7  ;;  %s793_s19 = smov 96   ;;  %s794_s24 = smov 64   ;;  %v745_v0 = vld [vmem:[%s947_s1 + $0x8] sm:$0xff]  }
   0x5   : > { %694 = vmatprep.subr.bf16.mxu0 %v789_v2  ;;  %704 = vmatprep.mubr.msk.bf16.mxu1 %vm790_vm1, %v789_v2  ;;  %v30_v7 = vunpack.c.l.bf16 %v29_v6  ;;  %v654_v43 = vld [vmem:[%s841_s17 + $0x1] sm:$0x1]  ;;  %s172_s7 = scalar_lea.vmem %s948_s2, %s647_s14  ;;  %s24_s9 = sadd.s32 1, %s786_s9  }
   0x6   : > { %v131_v28 = vunpack.c.0.s8 %v130_v26  ;;  %701 = vmatpush3.bf16.msra.mxu1 %v742_v33  ;;  %v180_v44 = vunpack.c.l.bf16 %v654_v43  ;;  %v744_v63 = vld [vmem:[%s947_s1] sm:$0xff]   ;;  %v747_v33 = vld [vmem:[%s947_s1 + $0x8] sm:$0xff]   ;;  %p21_p0 = scmp.ge.s32.totalorder %s24_s9, 2  }
   0x7   : > { %702 = vmatprep.subr.bf16.mxu1 %v789_v2 }
   0x8   : > { %v26_v4 = vld [vmem:[#allocation2] sm:$0x3]  ;;  %695 = vmatpush3.bf16.msra.mxu0 %v741_v3  ;;  %v652_v14 = vld.sshfl [vmem:[#allocation3] sm:$0x3 pattern:$0x76325410]  ;;  %v850_v30 = vsub.s32 %v131_v28, %v847_v29 }
   0x9   : > { %v31_v5 = vpack.c.bf16 %v26_v4, %v26_v4  ;;  %708 = vmatprep.subr.bf16.mxu0 %v789_v2 }
   0xa   : > { %703 = vmatpush3.bf16.msra.mxu1 %v743_v34 }
   0xb   : > { %697 = vmatmul.mubr.msk.bf16.vlgmr.msra.gmra.mrb[0].mxu0 %vm48_vm2, %v31_v5  ;;  %716 = vmatprep.subr.bf16.mxu1 %v789_v2 }
   0xc   : > { %712 = vmatprep.mubr.msk.bf16.mxu0 %vm790_vm1, %v789_v2  ;;  %709 = vmatpush3.bf16.msra.mxu0 %v744_v63 }
   0xd   : > { %710 = vmatprep.subr.bf16.mxu0 %v789_v2 }
  0x10   : > { %711 = vmatpush3.bf16.msra.mxu0 %v745_v0 }
  0xde   : > { %v86_v8 = vpop.f32.mrb[0].mxu0 }
  0xdf   : > { %v92_v9 = vadd.f32 %v86_v8, %v30_v7  ;;  %v698_v10 = vpop.f32.mrb[1].mxu0 }
  0xe0   : > { %v89_v11 = vpop.f32.mrb[2].mxu0  ;;  %v663_v10 = vld [vmem:[%s841_s17 + $0x2] sm:$0x1] }
  0xe1   : > { %748 = vtanh.f32 %v92_v9  ;;  %v699_v12 = vpop.f32.mrb[3].mxu0  ;;  %v651_v15 = vmul.f32 -1.442695, %v92_v9  ;;  %v327_v11 = vunpack.c.l.bf16 %v663_v10 }
  0xe3   : > { %750 = vpow2.f32 %v651_v15 }
  0xeb   : > { %v749_v13 = vpop.eup %748 }
  0xec   : > { %113 = vrot.lane.b32.xlu0 %v749_v13, %s791_s18 }
  0xed   : > { %v751_v16 = vpop.eup %750 }
  0xee   : > { %v96_v17 = vadd.f32 1.0, %v751_v16 }
  0xf0   : > { %108 = vrot.lane.b32.xlu0 %v652_v14, %s791_s18  ;;  %752 = vrcp.f32 %v96_v17 }
  0xfa   : > { %v753_v18 = vpop.eup %752 }
 0x15e   : > { %v114_v19 = vpop.permute.xlu0 %113 }
 0x15f   : > { %v116_v20 = vmul.f32 %v753_v18, %v114_v19 }
 0x161   : > { %118 = vrot.lane.b32.xlu1 %v116_v20, %s791_s18 }
 0x162   : > { %v109_v21 = vpop.permute.xlu0 %108 }
 0x163   : > { %v111_v22 = vmul.f32 %v753_v18, %v109_v21 }
 0x1d3   : > { %v119_v23 = vpop.permute.xlu1 %118 }
 0x1d4   : > { %v121_v24 = vadd.f32 %v119_v23, %v111_v22 }
 0x1d6   : > { %754 = vtanh.f32 %v121_v24  ;;  %v135_v32 = vrot.slane %v121_v24, %v850_v30 }
 0x1e0   : > { %v755_v31 = vpop.eup %754 }
 0x1e1   : > { %124 = vrot.lane.b32.xlu1 %v755_v31, %s791_s18 }
 0x1e5   : > { %136 = vrot.lane.b32.xlu1 %v135_v32, %s793_s19  ;;  %v746_v32 = vld [vmem:[%s947_s1] sm:$0xff]  }
 0x253   : > { %v125_v35 = vpop.permute.xlu1 %124 }
 0x254   : > { %v863_v36 = vmul.f32 %v753_v18, %v125_v35 }
 0x256   : > { %v148_v37 = vrot.slane %v863_v36, %v850_v30 }
 0x257   : > { %v137_v38 = vpop.permute.xlu1 %136 }
 0x258   : > { %140 = vst.msk [vmem:[#allocation3] sm:$0x3] %vm16_vm0, %v137_v38  ;;  %149 = vrot.lane.b32.xlu0 %v148_v37, %s794_s24 }
 0x25f   : > { %v659_v39 = vld.sshfl [vmem:[#allocation3] sm:$0x3 pattern:$0x76325410] }
 0x260   : > { %257 = vrot.lane.b32.xlu1 %v659_v39, %s791_s18 }
 0x2ca   : > { %v150_v40 = vpop.permute.xlu0 %149 }
 0x2cb   : > { %152 = vst.msk [vmem:[#allocation2] sm:$0x3] %vm16_vm0, %v150_v40 }
 0x2d2   : > { %v176_v41 = vld [vmem:[#allocation2] sm:$0x3]  ;;  %v258_v57 = vpop.permute.xlu1 %257 }
 0x2d3   : > { %v181_v42 = vpack.c.bf16 %v176_v41, %v176_v41 }
 0x2d5   : > { %705 = vmatmul.mubr.msk.bf16.vlgmr.msra.gmra.mrb[0].mxu1 %vm48_vm2, %v181_v42 }
 0x2d6   : > { %720 = vmatprep.mubr.msk.bf16.mxu1 %vm790_vm1, %v789_v2  ;;  %717 = vmatpush3.bf16.msra.mxu1 %v746_v32 }
 0x2d7   : > { %718 = vmatprep.subr.bf16.mxu1 %v789_v2  ;;  %v672_v2 = vld [vmem:[%s841_s17 + $0x3] sm:$0x1] }
 0x2d8   : > { %v474_v43 = vunpack.c.l.bf16 %v672_v2 }
 0x2da   : > { %719 = vmatpush3.bf16.msra.mxu1 %v747_v33 }
 0x3a8   : > { %v235_v45 = vpop.f32.mrb[0].mxu1 }
 0x3a9   : > { %v241_v46 = vadd.f32 %v235_v45, %v180_v44  ;;  %v706_v47 = vpop.f32.mrb[1].mxu1 }
 0x3aa   : > { %v238_v48 = vpop.f32.mrb[2].mxu1 }
 0x3ab   : > { %756 = vtanh.f32 %v241_v46  ;;  %v707_v49 = vpop.f32.mrb[3].mxu1  ;;  %v658_v51 = vmul.f32 -1.442695, %v241_v46 }
 0x3ad   : > { %758 = vpow2.f32 %v658_v51 }
 0x3b5   : > { %v757_v50 = vpop.eup %756 }
 0x3b6   : > { %262 = vrot.lane.b32.xlu0 %v757_v50, %s791_s18 }
 0x3b7   : > { %v759_v52 = vpop.eup %758 }
 0x3b8   : > { %v245_v53 = vadd.f32 1.0, %v759_v52 }
 0x3ba   : > { %760 = vrcp.f32 %v245_v53  ;;  %v795_v53 = vmov 1966171168  }
 0x3c4   : > { %v761_v54 = vpop.eup %760 }
 0x3c5   : > { %v260_v58 = vmul.f32 %v761_v54, %v258_v57  ;;  %v153_v57 = vpack.c.bf16 %v863_v36, %v863_v36 }
 0x428   : > { %v263_v55 = vpop.permute.xlu0 %262 }
 0x429   : > { %v265_v56 = vmul.f32 %v761_v54, %v263_v55 }
 0x42b   : > { %267 = vrot.lane.b32.xlu0 %v265_v56, %s791_s18 }
 0x49d   : > { %v268_v59 = vpop.permute.xlu0 %267 }
 0x49e   : > { %v270_v60 = vadd.f32 %v268_v59, %v260_v58 }
 0x4a0   : > { %762 = vtanh.f32 %v270_v60  ;;  %v284_v62 = vrot.slane %v270_v60, %v850_v30 }
 0x4aa   : > { %v763_v61 = vpop.eup %762 }
 0x4ab   : > { %273 = vrot.lane.b32.xlu1 %v763_v61, %s791_s18 }
 0x4af   : > { %285 = vrot.lane.b32.xlu1 %v284_v62, %s793_s19 }
 0x51d   : > { %v274_v1 = vpop.permute.xlu1 %273 }
 0x51e   : > { %v887_v3 = vmul.f32 %v761_v54, %v274_v1  ;;  %v156_v54 = vunpack.c.l.s4 %v795_v53 }
 0x520   : > { %v296_v4 = vrot.slane %v887_v3, %v850_v30  ;;  %v157_v55 = vunpack.c.0.s8 %v156_v54 }
 0x521   : > { %v286_v5 = vpop.permute.xlu1 %285 }
 0x522   : > { %288 = vst.msk [vmem:[#allocation3] sm:$0x3] %vm16_vm0, %v286_v5  ;;  %297 = vrot.lane.b32.xlu0 %v296_v4, %s794_s24  ;;  %v160_v56 = vsub.s32 %v157_v55, %v847_v29 }
 0x524   : > { %v161_v60 = vrot.slane %v153_v57, %v160_v56 }
 0x526   : > { %v168_v0 = vrot.slane %v161_v60, %v160_v56 }
 0x529   : > { %v668_v6 = vld.sshfl [vmem:[#allocation3] sm:$0x3 pattern:$0x76325410] }
 0x52a   : > { %404 = vrot.lane.b32.xlu1 %v668_v6, %s791_s18 }
 0x594   : > { %v298_v7 = vpop.permute.xlu0 %297 }
 0x595   : > { %300 = vst.msk [vmem:[#allocation2] sm:$0x3] %vm16_vm0, %v298_v7  ;;  %v301_v7 = vpack.c.bf16 %v887_v3, %v887_v3 }
 0x59c   : > { %v323_v8 = vld [vmem:[#allocation2] sm:$0x3]  ;;  %v405_v24 = vpop.permute.xlu1 %404 }
 0x59d   : > { %v328_v9 = vpack.c.bf16 %v323_v8, %v323_v8 }
 0x59f   : > { %713 = vmatmul.mubr.msk.bf16.vlgmr.msra.gmra.mrb[4].mxu0 %vm48_vm2, %v328_v9  ;;  %v309_v9 = vrot.slane %v301_v7, %v160_v56 }
 0x672   : > { %v382_v12 = vpop.f32.mrb[4].mxu0 }
 0x673   : > { %v388_v13 = vadd.f32 %v382_v12, %v327_v11  ;;  %v714_v14 = vpop.f32.mrb[5].mxu0  ;;  %v316_v11 = vrot.slane %v309_v9, %v160_v56 }
 0x674   : > { %v385_v15 = vpop.f32.mrb[6].mxu0 }
 0x675   : > { %764 = vtanh.f32 %v388_v13  ;;  %v715_v16 = vpop.f32.mrb[7].mxu0  ;;  %v667_v18 = vmul.f32 -1.442695, %v388_v13 }
 0x677   : > { %766 = vpow2.f32 %v667_v18 }
 0x67f   : > { %v765_v17 = vpop.eup %764 }
 0x680   : > { %409 = vrot.lane.b32.xlu0 %v765_v17, %s791_s18 }
 0x681   : > { %v767_v19 = vpop.eup %766 }
 0x682   : > { %v392_v20 = vadd.f32 1.0, %v767_v19 }
 0x684   : > { %768 = vrcp.f32 %v392_v20 }
 0x68e   : > { %v769_v21 = vpop.eup %768 }
 0x68f   : > { %v407_v25 = vmul.f32 %v769_v21, %v405_v24 }
 0x6f2   : > { %v410_v22 = vpop.permute.xlu0 %409 }
 0x6f3   : > { %v412_v23 = vmul.f32 %v769_v21, %v410_v22 }
 0x6f5   : > { %414 = vrot.lane.b32.xlu0 %v412_v23, %s791_s18 }
 0x767   : > { %v415_v26 = vpop.permute.xlu0 %414 }
 0x768   : > { %v417_v27 = vadd.f32 %v415_v26, %v407_v25 }
 0x76a   : > { %770 = vtanh.f32 %v417_v27  ;;  %v431_v31 = vrot.slane %v417_v27, %v850_v30 }
 0x774   : > { %v771_v28 = vpop.eup %770 }
 0x775   : > { %420 = vrot.lane.b32.xlu1 %v771_v28, %s791_s18 }
 0x779   : > { %432 = vrot.lane.b32.xlu1 %v431_v31, %s793_s19 }
 0x7e7   : > { %v421_v34 = vpop.permute.xlu1 %420 }
 0x7e8   : > { %v423_v35 = vmul.f32 %v769_v21, %v421_v34 }
 0x7ea   : > { %v443_v37 = vrot.slane %v423_v35, %v850_v30  ;;  %v448_v61 = vpack.c.bf16 %v423_v35, %v423_v35 }
 0x7eb   : > { %v433_v38 = vpop.permute.xlu1 %432 }
 0x7ec   : > { %435 = vst.msk [vmem:[#allocation3] sm:$0x3] %vm16_vm0, %v433_v38  ;;  %444 = vrot.lane.b32.xlu0 %v443_v37, %s794_s24  ;;  %v456_v63 = vrot.slane %v448_v61, %v160_v56 }
 0x7ee   : > { %v463_v1 = vrot.slane %v456_v63, %v160_v56 }
 0x7f3   : > { %v677_v39 = vld.sshfl [vmem:[#allocation3] sm:$0x3 pattern:$0x76325410] }
 0x7f4   : > { %551 = vrot.lane.b32.xlu1 %v677_v39, %s791_s18 }
 0x85e   : > { %v445_v40 = vpop.permute.xlu0 %444 }
 0x85f   : > { %447 = vst.msk [vmem:[#allocation2] sm:$0x3] %vm16_vm0, %v445_v40 }
 0x866   : > { %v470_v41 = vld [vmem:[#allocation2] sm:$0x3]  ;;  %v552_v4 = vpop.permute.xlu1 %551 }
 0x867   : > { %v475_v42 = vpack.c.bf16 %v470_v41, %v470_v41 }
 0x869   : > { %721 = vmatmul.mubr.msk.bf16.vlgmr.msra.gmra.mrb[4].mxu1 %vm48_vm2, %v475_v42 }
 0x93c   : > { %v529_v44 = vpop.f32.mrb[4].mxu1 }
 0x93d   : > { %v535_v45 = vadd.f32 %v529_v44, %v474_v43  ;;  %v722_v46 = vpop.f32.mrb[5].mxu1 }
 0x93e   : > { %v532_v47 = vpop.f32.mrb[6].mxu1 }
 0x93f   : > { %772 = vtanh.f32 %v535_v45  ;;  %v723_v48 = vpop.f32.mrb[7].mxu1  ;;  %v676_v50 = vmul.f32 -1.442695, %v535_v45 }
 0x941   : > { %774 = vpow2.f32 %v676_v50 }
 0x949   : > { %v773_v49 = vpop.eup %772 }
 0x94a   : > { %556 = vrot.lane.b32.xlu0 %v773_v49, %s791_s18 }
 0x94b   : > { %v775_v51 = vpop.eup %774 }
 0x94c   : > { %v539_v52 = vadd.f32 1.0, %v775_v51 }
 0x94e   : > { %776 = vrcp.f32 %v539_v52 }
 0x958   : > { %v777_v58 = vpop.eup %776 }
 0x959   : > { %v554_v29 = vmul.f32 %v777_v58, %v552_v4 }
 0x9bc   : > { %v557_v59 = vpop.permute.xlu0 %556 }
 0x9bd   : > { %v559_v62 = vmul.f32 %v777_v58, %v557_v59 }
 0x9bf   : > { %561 = vrot.lane.b32.xlu0 %v559_v62, %s791_s18 }
 0x9c3   : > { %169 = vrot.lane.b32.xlu0 %v168_v0, %s794_s24 }
 0x9c7   : > { %464 = vrot.lane.b32.xlu0 %v463_v1, %s794_s24 }
 0xa31   : > { %v562_v5 = vpop.permute.xlu0 %561 }
 0xa32   : > { %v564_v6 = vadd.f32 %v562_v5, %v554_v29 }
 0xa34   : > { %778 = vtanh.f32 %v564_v6  ;;  %v578_v12 = vrot.slane %v564_v6, %v850_v30 }
 0xa35   : > { %v170_v36 = vpop.permute.xlu0 %169 }
 0xa36   : > { %174 = vst.msk [vmem:[%s172_s7] sm:$0x1] %vm173_vm3, %v170_v36 }
 0xa39   : > { %v465_v8 = vpop.permute.xlu0 %464 }
 0xa3a   : > { %670 = vst.msk [vmem:[%s172_s7 + $0x2] sm:$0x1] %vm173_vm3, %v465_v8 }
 0xa3e   : > { %v779_v10 = vpop.eup %778 }
 0xa3f   : > { %567 = vrot.lane.b32.xlu1 %v779_v10, %s791_s18 }
 0xa43   : > { %317 = vrot.lane.b32.xlu1 %v316_v11, %s794_s24 }
 0xa47   : > { %579 = vrot.lane.b32.xlu1 %v578_v12, %s793_s19 }
 0xab1   : > { %v568_v13 = vpop.permute.xlu1 %567 }
 0xab2   : > { %v570_v14 = vmul.f32 %v777_v58, %v568_v13 }
 0xab4   : > { %v590_v15 = vrot.slane %v570_v14, %v850_v30  ;;  %v595_v16 = vpack.c.bf16 %v570_v14, %v570_v14 }
 0xab5   : > { %v318_v3 = vpop.permute.xlu1 %317 }
 0xab6   : > { %v603_v17 = vrot.slane %v595_v16, %v160_v56  ;;  %661 = vst.msk [vmem:[%s172_s7 + $0x1] sm:$0x1] %vm173_vm3, %v318_v3  ;;  %591 = vrot.lane.b32.xlu0 %v590_v15, %s794_s24 }
 0xab8   : > { %v610_v18 = vrot.slane %v603_v17, %v160_v56 }
 0xab9   : > { %v580_v19 = vpop.permute.xlu1 %579 }
 0xaba   : > { %582 = vst.msk [vmem:[#allocation3] sm:$0x3] %vm16_vm0, %v580_v19  ;;  %611 = vrot.lane.b32.xlu1 %v610_v18, %s794_s24 }
 0xb27   :  { %23 = sbr.rel (!%p21_p0) target bundleno = 2 (0x2), region = 47 }
 0xb28   : > { %v592_v20 = vpop.permute.xlu0 %591 }
 0xb29   : > { %594 = vst.msk [vmem:[#allocation2] sm:$0x3] %vm16_vm0, %v592_v20 }
 0xb2c   : > { %v612_v21 = vpop.permute.xlu1 %611 }
 0xb2d   : > { %679 = vst.msk [vmem:[%s172_s7 + $0x3] sm:$0x1] %vm173_vm3, %v612_v21 }

</bundles_post_ra>
